<compile_context>
chip_gen: v7x
topology: tpu7x:2x2x1
jax: 0.10.0
libtpu: 0.0.40
codegen_flags: <defaults>
</compile_context>

<pallas_src>
import functools
import math

import jax
import jax.numpy as jnp
from jax.experimental import pallas as pl
from jax.experimental.pallas import tpu as pltpu


# ----------------------------------------------------------------------------
# Fused encoder-layer kernel (one grid step == one batch element)
# ----------------------------------------------------------------------------

def _encoder_layer_kernel(src_ref, pos_ref,
                          w_qk_ref, b_qk_ref, w_v_ref, b_v_ref,
                          w_o_ref, b_o_ref,
                          g1_ref, be1_ref,
                          w1_ref, b1_ref, w2_ref, b2_ref,
                          g2_ref, be2_ref,
                          o_ref, *, nhead, eps):
    f32 = jnp.float32
    src = src_ref[0].astype(f32)                    # (S, D)
    xp = src + pos_ref[0].astype(f32)               # q = k = src + pos

    S, D = src.shape
    hd = D // nhead
    scale = float(hd) ** -0.5

    # ---- fused Q|K projection (input = src+pos) and V projection (input = src)
    qk = jnp.dot(xp, w_qk_ref[...], preferred_element_type=f32) + b_qk_ref[...]   # (S, 2D)
    v = jnp.dot(src, w_v_ref[...], preferred_element_type=f32) + b_v_ref[...]     # (S, D)

    # ---- per-head attention fused with out_proj accumulation
    acc = None
    for h in range(nhead):
        qh = qk[:, h * hd:(h + 1) * hd] * scale
        kh = qk[:, D + h * hd:D + (h + 1) * hd]
        vh = v[:, h * hd:(h + 1) * hd]
        # s = q_h k_h^T (contract last dims, no explicit transpose)
        s = jax.lax.dot_general(qh, kh, (((1,), (1,)), ((), ())),
                                preferred_element_type=f32)                       # (S, S)
        m = jnp.max(s, axis=-1, keepdims=True)
        p = jnp.exp(s - m)
        p = p * pl.reciprocal(jnp.sum(p, axis=-1, keepdims=True), approx=True)
        oh = jnp.dot(p, vh, preferred_element_type=f32)                           # (S, hd)
        term = jnp.dot(oh, w_o_ref[h * hd:(h + 1) * hd, :],
                       preferred_element_type=f32)                                # (S, D)
        acc = term if acc is None else acc + term
    attn = acc + b_o_ref[...]                                                     # (S, D)

    # ---- residual + LayerNorm1
    x = src + attn
    mu = jnp.mean(x, axis=-1, keepdims=True)
    var = jnp.mean(jnp.square(x - mu), axis=-1, keepdims=True)
    x = (x - mu) * jax.lax.rsqrt(var + eps) * g1_ref[...] + be1_ref[...]

    # ---- FFN: linear2(relu(linear1(x)))  (dropout = identity)
    h1 = jnp.dot(x, w1_ref[...], preferred_element_type=f32) + b1_ref[...]
    h1 = jnp.maximum(h1, 0.0)
    y = jnp.dot(h1, w2_ref[...], preferred_element_type=f32) + b2_ref[...]

    # ---- residual + LayerNorm2
    z = x + y
    mu = jnp.mean(z, axis=-1, keepdims=True)
    var = jnp.mean(jnp.square(z - mu), axis=-1, keepdims=True)
    z = (z - mu) * jax.lax.rsqrt(var + eps) * g2_ref[...] + be2_ref[...]

    o_ref[0] = z.astype(o_ref.dtype)


# ----------------------------------------------------------------------------
# Wrapper
# ----------------------------------------------------------------------------

def _pinned(shape):
    zeros = (0,) * len(shape)
    return pl.BlockSpec(shape, lambda b, _z=zeros: _z)


def encoder_layer_forward(params, src, pos=None, *, nhead, eps=1e-5):
    """src, pos: (S, B, D) sequence-major, like PyTorch.  Returns (S, B, D)."""
    S, B, D = src.shape
    if pos is None:
        pos = jnp.zeros_like(src)
    dff = params["w1"].shape[1]

    src_b = jnp.transpose(src, (1, 0, 2))   # (B, S, D)
    pos_b = jnp.transpose(pos, (1, 0, 2))

    b_qk = params["b_qk"].reshape(1, 2 * D)
    b_v = params["b_v"].reshape(1, D)
    b_o = params["b_o"].reshape(1, D)
    g1 = params["ln1_g"].reshape(1, D)
    be1 = params["ln1_b"].reshape(1, D)
    b1 = params["b1"].reshape(1, dff)
    b2 = params["b2"].reshape(1, D)
    g2 = params["ln2_g"].reshape(1, D)
    be2 = params["ln2_b"].reshape(1, D)

    in_specs = [
        pl.BlockSpec((1, S, D), lambda b: (b, 0, 0)),   # src
        pl.BlockSpec((1, S, D), lambda b: (b, 0, 0)),   # pos
        _pinned((D, 2 * D)), _pinned((1, 2 * D)),       # w_qk, b_qk
        _pinned((D, D)), _pinned((1, D)),               # w_v, b_v
        _pinned((D, D)), _pinned((1, D)),               # w_o, b_o
        _pinned((1, D)), _pinned((1, D)),               # ln1 gamma / beta
        _pinned((D, dff)), _pinned((1, dff)),           # w1, b1
        _pinned((dff, D)), _pinned((1, D)),             # w2, b2
        _pinned((1, D)), _pinned((1, D)),               # ln2 gamma / beta
    ]
    out_specs = pl.BlockSpec((1, S, D), lambda b: (b, 0, 0))

    # Rough cost hint for the XLA scheduler.
    hd = D // nhead
    flops = 2 * B * S * D * (2 * D)                       # q/k projection
    flops += 2 * B * S * D * D                            # v projection
    flops += 2 * B * nhead * S * S * hd * 2               # qk^T and pv
    flops += 2 * B * S * D * D                            # out_proj
    flops += 2 * B * S * D * dff * 2                      # ffn
    trans = B * nhead * S * S                             # exp
    n_weight_elems = D * 2 * D + 2 * D + 2 * (D * D + D) + 4 * D + D * dff + dff + dff * D + D
    bytes_acc = 4 * (3 * B * S * D + n_weight_elems)

    # TODO(synk): for large (S, D, dff) set pltpu.CompilerParams(vmem_limit_bytes=...)
    # against the generation's VMEM budget (64 MiB physical on v7x).
    out_b = pl.pallas_call(
        functools.partial(_encoder_layer_kernel, nhead=nhead, eps=eps),
        grid=(B,),
        in_specs=in_specs,
        out_specs=out_specs,
        out_shape=jax.ShapeDtypeStruct((B, S, D), src.dtype),
        compiler_params=pltpu.CompilerParams(dimension_semantics=("parallel",)),
        cost_estimate=pl.CostEstimate(flops=int(flops), transcendentals=int(trans),
                                      bytes_accessed=int(bytes_acc)),
    )(src_b, pos_b,
      params["w_qk"], b_qk, params["w_v"], b_v,
      params["w_o"], b_o,
      g1, be1,
      params["w1"], b1, params["w2"], b2,
      g2, be2)

    return jnp.transpose(out_b, (1, 0, 2))


# ----------------------------------------------------------------------------
# Deterministic parameter init + pure-JAX reference + example run
# ----------------------------------------------------------------------------

def init_params(key, d_model, nhead, dim_feedforward):
    ks = jax.random.split(key, 6)

    def lin(k, din, dout):
        kw, kb = jax.random.split(k)
        w = jax.random.normal(kw, (din, dout), jnp.float32) * 0.05   # stored (Din, Dout)
        b = jax.random.normal(kb, (dout,), jnp.float32) * 0.05
        return w, b

    wq, bq = lin(ks[0], d_model, d_model)
    wk, bk = lin(ks[1], d_model, d_model)
    wv, bv = lin(ks[2], d_model, d_model)
    wo, bo = lin(ks[3], d_model, d_model)
    w1, b1 = lin(ks[4], d_model, dim_feedforward)
    w2, b2 = lin(ks[5], dim_feedforward, d_model)
    return {
        # fused q|k in-projection (applied to src+pos); v projection kept separate (src)
        "w_qk": jnp.concatenate([wq, wk], axis=1),
        "b_qk": jnp.concatenate([bq, bk]),
        "w_v": wv, "b_v": bv,
        "w_o": wo, "b_o": bo,
        "ln1_g": jnp.ones((d_model,), jnp.float32),
        "ln1_b": jnp.zeros((d_model,), jnp.float32),
        "w1": w1, "b1": b1,
        "w2": w2, "b2": b2,
        "ln2_g": jnp.ones((d_model,), jnp.float32),
        "ln2_b": jnp.zeros((d_model,), jnp.float32),
    }


def reference_forward(params, src, pos, nhead, eps=1e-5):
    S, B, D = src.shape
    hd = D // nhead
    xp = src + pos
    qk = jnp.einsum('sbd,de->sbe', xp, params["w_qk"]) + params["b_qk"]
    q, k = qk[..., :D], qk[..., D:]
    v = jnp.einsum('sbd,de->sbe', src, params["w_v"]) + params["b_v"]
    qh = q.reshape(S, B, nhead, hd) * (float(hd) ** -0.5)
    kh = k.reshape(S, B, nhead, hd)
    vh = v.reshape(S, B, nhead, hd)
    s = jnp.einsum('qbhd,kbhd->bhqk', qh, kh)
    p = jax.nn.softmax(s, axis=-1)
    o = jnp.einsum('bhqk,kbhd->qbhd', p, vh).reshape(S, B, D)
    attn = jnp.einsum('sbd,de->sbe', o, params["w_o"]) + params["b_o"]

    def ln(x, g, b):
        mu = x.mean(-1, keepdims=True)
        var = ((x - mu) ** 2).mean(-1, keepdims=True)
        return (x - mu) * jax.lax.rsqrt(var + eps) * g + b

    x1 = ln(src + attn, params["ln1_g"], params["ln1_b"])
    h = jax.nn.relu(jnp.einsum('sbd,df->sbf', x1, params["w1"]) + params["b1"])
    y = jnp.einsum('sbf,fd->sbd', h, params["w2"]) + params["b2"]
    return ln(x1 + y, params["ln2_g"], params["ln2_b"])


if __name__ == "__main__":
    d_model = 32
    nhead = 4
    dim_feedforward = 64
    seq = 8    # S
    bs = 2     # B

    root = jax.random.PRNGKey(0)
    kp, k1, k2 = jax.random.split(root, 3)
    params = init_params(kp, d_model, nhead, dim_feedforward)

    src = jax.random.normal(k1, (seq, bs, d_model), jnp.float32)
    pos = jax.random.normal(k2, (seq, bs, d_model), jnp.float32)

    fwd = jax.jit(functools.partial(encoder_layer_forward, nhead=nhead))
    out = fwd(params, src, pos)
    out = jax.block_until_ready(out)

    assert out.shape == (seq, bs, d_model)
    assert bool(jnp.all(jnp.isfinite(out)))

    ref = reference_forward(params, src, pos, nhead)
    assert bool(jnp.allclose(out, ref, atol=1e-2, rtol=1e-2)), "mismatch vs JAX reference"

    print("KERNEL_OK")
</pallas_src>

<mosaic_0001>
module attributes {stable_mosaic.version = 11 : i64} {
  func.func @_encoder_layer_kernel(%arg0: i32, %arg1: memref<1x8x32xf32, #tpu.memory_space<vmem>>, %arg2: memref<1x8x32xf32, #tpu.memory_space<vmem>>, %arg3: memref<32x64xf32, #tpu.memory_space<vmem>>, %arg4: memref<1x64xf32, #tpu.memory_space<vmem>>, %arg5: memref<32x32xf32, #tpu.memory_space<vmem>>, %arg6: memref<1x32xf32, #tpu.memory_space<vmem>>, %arg7: memref<32x32xf32, #tpu.memory_space<vmem>>, %arg8: memref<1x32xf32, #tpu.memory_space<vmem>>, %arg9: memref<1x32xf32, #tpu.memory_space<vmem>>, %arg10: memref<1x32xf32, #tpu.memory_space<vmem>>, %arg11: memref<32x64xf32, #tpu.memory_space<vmem>>, %arg12: memref<1x64xf32, #tpu.memory_space<vmem>>, %arg13: memref<64x32xf32, #tpu.memory_space<vmem>>, %arg14: memref<1x32xf32, #tpu.memory_space<vmem>>, %arg15: memref<1x32xf32, #tpu.memory_space<vmem>>, %arg16: memref<1x32xf32, #tpu.memory_space<vmem>>, %arg17: memref<1x8x32xf32, #tpu.memory_space<vmem>>) attributes {dimension_semantics = [#tpu.dimension_semantics<parallel>], iteration_bounds = array<i64: 2>, scalar_prefetch = 0 : i64, scratch_operands = 0 : i64, tpu.core_type = #tpu.core_type<tc>, window_params = [{transform_indices = @transform_0, window_bounds = array<i64: 1, 8, 32>}, {transform_indices = @transform_1, window_bounds = array<i64: 1, 8, 32>}, {pipeline_mode = #tpu.pipeline_mode<synchronous>, transform_indices = @transform_2, window_bounds = array<i64: 32, 64>}, {pipeline_mode = #tpu.pipeline_mode<synchronous>, transform_indices = @transform_3, window_bounds = array<i64: 1, 64>}, {pipeline_mode = #tpu.pipeline_mode<synchronous>, transform_indices = @transform_4, window_bounds = array<i64: 32, 32>}, {pipeline_mode = #tpu.pipeline_mode<synchronous>, transform_indices = @transform_5, window_bounds = array<i64: 1, 32>}, {pipeline_mode = #tpu.pipeline_mode<synchronous>, transform_indices = @transform_6, window_bounds = array<i64: 32, 32>}, {pipeline_mode = #tpu.pipeline_mode<synchronous>, transform_indices = @transform_7, window_bounds = array<i64: 1, 32>}, {pipeline_mode = #tpu.pipeline_mode<synchronous>, transform_indices = @transform_8, window_bounds = array<i64: 1, 32>}, {pipeline_mode = #tpu.pipeline_mode<synchronous>, transform_indices = @transform_9, window_bounds = array<i64: 1, 32>}, {pipeline_mode = #tpu.pipeline_mode<synchronous>, transform_indices = @transform_10, window_bounds = array<i64: 32, 64>}, {pipeline_mode = #tpu.pipeline_mode<synchronous>, transform_indices = @transform_11, window_bounds = array<i64: 1, 64>}, {pipeline_mode = #tpu.pipeline_mode<synchronous>, transform_indices = @transform_12, window_bounds = array<i64: 64, 32>}, {pipeline_mode = #tpu.pipeline_mode<synchronous>, transform_indices = @transform_13, window_bounds = array<i64: 1, 32>}, {pipeline_mode = #tpu.pipeline_mode<synchronous>, transform_indices = @transform_14, window_bounds = array<i64: 1, 32>}, {pipeline_mode = #tpu.pipeline_mode<synchronous>, transform_indices = @transform_15, window_bounds = array<i64: 1, 32>}, {transform_indices = @transform_16, window_bounds = array<i64: 1, 8, 32>}]} {
    %c0 = arith.constant 0 : index
    %c0_0 = arith.constant 0 : index
    %c0_1 = arith.constant 0 : index
    %0 = vector.load %arg1[%c0, %c0_0, %c0_1] : memref<1x8x32xf32, #tpu.memory_space<vmem>>, vector<1x8x32xf32>
    %1 = vector.shape_cast %0 : vector<1x8x32xf32> to vector<8x32xf32>
    %c0_2 = arith.constant 0 : index
    %c0_3 = arith.constant 0 : index
    %c0_4 = arith.constant 0 : index
    %2 = vector.load %arg2[%c0_2, %c0_3, %c0_4] : memref<1x8x32xf32, #tpu.memory_space<vmem>>, vector<1x8x32xf32>
    %3 = vector.shape_cast %2 : vector<1x8x32xf32> to vector<8x32xf32>
    %4 = arith.addf %1, %3 : vector<8x32xf32>
    %c0_5 = arith.constant 0 : index
    %c0_6 = arith.constant 0 : index
    %5 = vector.load %arg3[%c0_5, %c0_6] : memref<32x64xf32, #tpu.memory_space<vmem>>, vector<32x64xf32>
    %cst = arith.constant dense<0.000000e+00> : vector<8x64xf32>
    %6 = tpu.matmul %4, %5, %cst {dimension_numbers = #tpu.dot_dimension_numbers<[1], [0], [0], [1], [0, 0, 1, 1], [], []>} : vector<8x32xf32>, vector<32x64xf32>, vector<8x64xf32> -> vector<8x64xf32>
    %c0_7 = arith.constant 0 : index
    %c0_8 = arith.constant 0 : index
    %7 = vector.load %arg4[%c0_7, %c0_8] : memref<1x64xf32, #tpu.memory_space<vmem>>, vector<1x64xf32>
    %8 = vector.broadcast %7 : vector<1x64xf32> to vector<8x64xf32>
    %9 = arith.addf %6, %8 : vector<8x64xf32>
    %c0_9 = arith.constant 0 : index
    %c0_10 = arith.constant 0 : index
    %10 = vector.load %arg5[%c0_9, %c0_10] : memref<32x32xf32, #tpu.memory_space<vmem>>, vector<32x32xf32>
    %cst_11 = arith.constant dense<0.000000e+00> : vector<8x32xf32>
    %11 = tpu.matmul %1, %10, %cst_11 {dimension_numbers = #tpu.dot_dimension_numbers<[1], [0], [0], [1], [0, 0, 1, 1], [], []>} : vector<8x32xf32>, vector<32x32xf32>, vector<8x32xf32> -> vector<8x32xf32>
    %c0_12 = arith.constant 0 : index
    %c0_13 = arith.constant 0 : index
    %12 = vector.load %arg6[%c0_12, %c0_13] : memref<1x32xf32, #tpu.memory_space<vmem>>, vector<1x32xf32>
    %13 = vector.broadcast %12 : vector<1x32xf32> to vector<8x32xf32>
    %14 = arith.addf %11, %13 : vector<8x32xf32>
    %15 = vector.extract_strided_slice %9 {offsets = [0, 0], sizes = [8, 8], strides = [1, 1]} : vector<8x64xf32> to vector<8x8xf32>
    %cst_14 = arith.constant 0.353553385 : f32
    %16 = vector.broadcast %cst_14 : f32 to vector<8x8xf32>
    %17 = arith.mulf %15, %16 : vector<8x8xf32>
    %18 = vector.extract_strided_slice %9 {offsets = [0, 32], sizes = [8, 8], strides = [1, 1]} : vector<8x64xf32> to vector<8x8xf32>
    %19 = vector.extract_strided_slice %14 {offsets = [0, 0], sizes = [8, 8], strides = [1, 1]} : vector<8x32xf32> to vector<8x8xf32>
    %cst_15 = arith.constant dense<0.000000e+00> : vector<8x8xf32>
    %20 = tpu.matmul %17, %18, %cst_15 {dimension_numbers = #tpu.dot_dimension_numbers<[1], [1], [0], [0], [0, 0, 1, 0], [], []>} : vector<8x8xf32>, vector<8x8xf32>, vector<8x8xf32> -> vector<8x8xf32>
    %cst_16 = arith.constant dense<0xFF800000> : vector<8xf32>
    %21 = vector.multi_reduction <maximumf>, %20, %cst_16 [1] : vector<8x8xf32> to vector<8xf32>
    %22 = vector.shape_cast %21 : vector<8xf32> to vector<8x1xf32>
    %23 = vector.broadcast %22 : vector<8x1xf32> to vector<8x8xf32>
    %24 = arith.subf %20, %23 : vector<8x8xf32>
    %25 = math.exp %24 : vector<8x8xf32>
    %cst_17 = arith.constant dense<0.000000e+00> : vector<8xf32>
    %26 = vector.multi_reduction <add>, %25, %cst_17 [1] : vector<8x8xf32> to vector<8xf32>
    %27 = vector.shape_cast %26 : vector<8xf32> to vector<8x1xf32>
    %28 = tpu.reciprocal %27 {approx = true} : vector<8x1xf32> -> vector<8x1xf32>
    %29 = vector.broadcast %28 : vector<8x1xf32> to vector<8x8xf32>
    %30 = arith.mulf %25, %29 : vector<8x8xf32>
    %cst_18 = arith.constant dense<0.000000e+00> : vector<8x8xf32>
    %31 = tpu.matmul %30, %19, %cst_18 {dimension_numbers = #tpu.dot_dimension_numbers<[1], [0], [0], [1], [0, 0, 1, 1], [], []>} : vector<8x8xf32>, vector<8x8xf32>, vector<8x8xf32> -> vector<8x8xf32>
    %c0_19 = arith.constant 0 : index
    %c0_20 = arith.constant 0 : index
    %32 = vector.load %arg7[%c0_19, %c0_20] : memref<32x32xf32, #tpu.memory_space<vmem>>, vector<8x32xf32>
    %cst_21 = arith.constant dense<0.000000e+00> : vector<8x32xf32>
    %33 = tpu.matmul %31, %32, %cst_21 {dimension_numbers = #tpu.dot_dimension_numbers<[1], [0], [0], [1], [0, 0, 1, 1], [], []>} : vector<8x8xf32>, vector<8x32xf32>, vector<8x32xf32> -> vector<8x32xf32>
    %34 = vector.extract_strided_slice %9 {offsets = [0, 8], sizes = [8, 8], strides = [1, 1]} : vector<8x64xf32> to vector<8x8xf32>
    %cst_22 = arith.constant 0.353553385 : f32
    %35 = vector.broadcast %cst_22 : f32 to vector<8x8xf32>
    %36 = arith.mulf %34, %35 : vector<8x8xf32>
    %37 = vector.extract_strided_slice %9 {offsets = [0, 40], sizes = [8, 8], strides = [1, 1]} : vector<8x64xf32> to vector<8x8xf32>
    %38 = vector.extract_strided_slice %14 {offsets = [0, 8], sizes = [8, 8], strides = [1, 1]} : vector<8x32xf32> to vector<8x8xf32>
    %cst_23 = arith.constant dense<0.000000e+00> : vector<8x8xf32>
    %39 = tpu.matmul %36, %37, %cst_23 {dimension_numbers = #tpu.dot_dimension_numbers<[1], [1], [0], [0], [0, 0, 1, 0], [], []>} : vector<8x8xf32>, vector<8x8xf32>, vector<8x8xf32> -> vector<8x8xf32>
    %cst_24 = arith.constant dense<0xFF800000> : vector<8xf32>
    %40 = vector.multi_reduction <maximumf>, %39, %cst_24 [1] : vector<8x8xf32> to vector<8xf32>
    %41 = vector.shape_cast %40 : vector<8xf32> to vector<8x1xf32>
    %42 = vector.broadcast %41 : vector<8x1xf32> to vector<8x8xf32>
    %43 = arith.subf %39, %42 : vector<8x8xf32>
    %44 = math.exp %43 : vector<8x8xf32>
    %cst_25 = arith.constant dense<0.000000e+00> : vector<8xf32>
    %45 = vector.multi_reduction <add>, %44, %cst_25 [1] : vector<8x8xf32> to vector<8xf32>
    %46 = vector.shape_cast %45 : vector<8xf32> to vector<8x1xf32>
    %47 = tpu.reciprocal %46 {approx = true} : vector<8x1xf32> -> vector<8x1xf32>
    %48 = vector.broadcast %47 : vector<8x1xf32> to vector<8x8xf32>
    %49 = arith.mulf %44, %48 : vector<8x8xf32>
    %cst_26 = arith.constant dense<0.000000e+00> : vector<8x8xf32>
    %50 = tpu.matmul %49, %38, %cst_26 {dimension_numbers = #tpu.dot_dimension_numbers<[1], [0], [0], [1], [0, 0, 1, 1], [], []>} : vector<8x8xf32>, vector<8x8xf32>, vector<8x8xf32> -> vector<8x8xf32>
    %c8 = arith.constant 8 : index
    %c0_27 = arith.constant 0 : index
    %51 = vector.load %arg7[%c8, %c0_27] : memref<32x32xf32, #tpu.memory_space<vmem>>, vector<8x32xf32>
    %cst_28 = arith.constant dense<0.000000e+00> : vector<8x32xf32>
    %52 = tpu.matmul %50, %51, %cst_28 {dimension_numbers = #tpu.dot_dimension_numbers<[1], [0], [0], [1], [0, 0, 1, 1], [], []>} : vector<8x8xf32>, vector<8x32xf32>, vector<8x32xf32> -> vector<8x32xf32>
    %53 = arith.addf %33, %52 : vector<8x32xf32>
    %54 = vector.extract_strided_slice %9 {offsets = [0, 16], sizes = [8, 8], strides = [1, 1]} : vector<8x64xf32> to vector<8x8xf32>
    %cst_29 = arith.constant 0.353553385 : f32
    %55 = vector.broadcast %cst_29 : f32 to vector<8x8xf32>
    %56 = arith.mulf %54, %55 : vector<8x8xf32>
    %57 = vector.extract_strided_slice %9 {offsets = [0, 48], sizes = [8, 8], strides = [1, 1]} : vector<8x64xf32> to vector<8x8xf32>
    %58 = vector.extract_strided_slice %14 {offsets = [0, 16], sizes = [8, 8], strides = [1, 1]} : vector<8x32xf32> to vector<8x8xf32>
    %cst_30 = arith.constant dense<0.000000e+00> : vector<8x8xf32>
    %59 = tpu.matmul %56, %57, %cst_30 {dimension_numbers = #tpu.dot_dimension_numbers<[1], [1], [0], [0], [0, 0, 1, 0], [], []>} : vector<8x8xf32>, vector<8x8xf32>, vector<8x8xf32> -> vector<8x8xf32>
    %cst_31 = arith.constant dense<0xFF800000> : vector<8xf32>
    %60 = vector.multi_reduction <maximumf>, %59, %cst_31 [1] : vector<8x8xf32> to vector<8xf32>
    %61 = vector.shape_cast %60 : vector<8xf32> to vector<8x1xf32>
    %62 = vector.broadcast %61 : vector<8x1xf32> to vector<8x8xf32>
    %63 = arith.subf %59, %62 : vector<8x8xf32>
    %64 = math.exp %63 : vector<8x8xf32>
    %cst_32 = arith.constant dense<0.000000e+00> : vector<8xf32>
    %65 = vector.multi_reduction <add>, %64, %cst_32 [1] : vector<8x8xf32> to vector<8xf32>
    %66 = vector.shape_cast %65 : vector<8xf32> to vector<8x1xf32>
    %67 = tpu.reciprocal %66 {approx = true} : vector<8x1xf32> -> vector<8x1xf32>
    %68 = vector.broadcast %67 : vector<8x1xf32> to vector<8x8xf32>
    %69 = arith.mulf %64, %68 : vector<8x8xf32>
    %cst_33 = arith.constant dense<0.000000e+00> : vector<8x8xf32>
    %70 = tpu.matmul %69, %58, %cst_33 {dimension_numbers = #tpu.dot_dimension_numbers<[1], [0], [0], [1], [0, 0, 1, 1], [], []>} : vector<8x8xf32>, vector<8x8xf32>, vector<8x8xf32> -> vector<8x8xf32>
    %c16 = arith.constant 16 : index
    %c0_34 = arith.constant 0 : index
    %71 = vector.load %arg7[%c16, %c0_34] : memref<32x32xf32, #tpu.memory_space<vmem>>, vector<8x32xf32>
    %cst_35 = arith.constant dense<0.000000e+00> : vector<8x32xf32>
    %72 = tpu.matmul %70, %71, %cst_35 {dimension_numbers = #tpu.dot_dimension_numbers<[1], [0], [0], [1], [0, 0, 1, 1], [], []>} : vector<8x8xf32>, vector<8x32xf32>, vector<8x32xf32> -> vector<8x32xf32>
    %73 = arith.addf %53, %72 : vector<8x32xf32>
    %74 = vector.extract_strided_slice %9 {offsets = [0, 24], sizes = [8, 8], strides = [1, 1]} : vector<8x64xf32> to vector<8x8xf32>
    %cst_36 = arith.constant 0.353553385 : f32
    %75 = vector.broadcast %cst_36 : f32 to vector<8x8xf32>
    %76 = arith.mulf %74, %75 : vector<8x8xf32>
    %77 = vector.extract_strided_slice %9 {offsets = [0, 56], sizes = [8, 8], strides = [1, 1]} : vector<8x64xf32> to vector<8x8xf32>
    %78 = vector.extract_strided_slice %14 {offsets = [0, 24], sizes = [8, 8], strides = [1, 1]} : vector<8x32xf32> to vector<8x8xf32>
    %cst_37 = arith.constant dense<0.000000e+00> : vector<8x8xf32>
    %79 = tpu.matmul %76, %77, %cst_37 {dimension_numbers = #tpu.dot_dimension_numbers<[1], [1], [0], [0], [0, 0, 1, 0], [], []>} : vector<8x8xf32>, vector<8x8xf32>, vector<8x8xf32> -> vector<8x8xf32>
    %cst_38 = arith.constant dense<0xFF800000> : vector<8xf32>
    %80 = vector.multi_reduction <maximumf>, %79, %cst_38 [1] : vector<8x8xf32> to vector<8xf32>
    %81 = vector.shape_cast %80 : vector<8xf32> to vector<8x1xf32>
    %82 = vector.broadcast %81 : vector<8x1xf32> to vector<8x8xf32>
    %83 = arith.subf %79, %82 : vector<8x8xf32>
    %84 = math.exp %83 : vector<8x8xf32>
    %cst_39 = arith.constant dense<0.000000e+00> : vector<8xf32>
    %85 = vector.multi_reduction <add>, %84, %cst_39 [1] : vector<8x8xf32> to vector<8xf32>
    %86 = vector.shape_cast %85 : vector<8xf32> to vector<8x1xf32>
    %87 = tpu.reciprocal %86 {approx = true} : vector<8x1xf32> -> vector<8x1xf32>
    %88 = vector.broadcast %87 : vector<8x1xf32> to vector<8x8xf32>
    %89 = arith.mulf %84, %88 : vector<8x8xf32>
    %cst_40 = arith.constant dense<0.000000e+00> : vector<8x8xf32>
    %90 = tpu.matmul %89, %78, %cst_40 {dimension_numbers = #tpu.dot_dimension_numbers<[1], [0], [0], [1], [0, 0, 1, 1], [], []>} : vector<8x8xf32>, vector<8x8xf32>, vector<8x8xf32> -> vector<8x8xf32>
    %c24 = arith.constant 24 : index
    %c0_41 = arith.constant 0 : index
    %91 = vector.load %arg7[%c24, %c0_41] : memref<32x32xf32, #tpu.memory_space<vmem>>, vector<8x32xf32>
    %cst_42 = arith.constant dense<0.000000e+00> : vector<8x32xf32>
    %92 = tpu.matmul %90, %91, %cst_42 {dimension_numbers = #tpu.dot_dimension_numbers<[1], [0], [0], [1], [0, 0, 1, 1], [], []>} : vector<8x8xf32>, vector<8x32xf32>, vector<8x32xf32> -> vector<8x32xf32>
    %93 = arith.addf %73, %92 : vector<8x32xf32>
    %c0_43 = arith.constant 0 : index
    %c0_44 = arith.constant 0 : index
    %94 = vector.load %arg8[%c0_43, %c0_44] : memref<1x32xf32, #tpu.memory_space<vmem>>, vector<1x32xf32>
    %95 = vector.broadcast %94 : vector<1x32xf32> to vector<8x32xf32>
    %96 = arith.addf %93, %95 : vector<8x32xf32>
    %97 = arith.addf %1, %96 : vector<8x32xf32>
    %cst_45 = arith.constant dense<0.000000e+00> : vector<8xf32>
    %98 = vector.multi_reduction <add>, %97, %cst_45 [1] : vector<8x32xf32> to vector<8xf32>
    %99 = vector.shape_cast %98 : vector<8xf32> to vector<8x1xf32>
    %cst_46 = arith.constant 3.200000e+01 : f32
    %100 = vector.broadcast %cst_46 : f32 to vector<8x1xf32>
    %101 = arith.divf %99, %100 : vector<8x1xf32>
    %102 = vector.broadcast %101 : vector<8x1xf32> to vector<8x32xf32>
    %103 = arith.subf %97, %102 : vector<8x32xf32>
    %104 = arith.mulf %103, %103 : vector<8x32xf32>
    %cst_47 = arith.constant dense<0.000000e+00> : vector<8xf32>
    %105 = vector.multi_reduction <add>, %104, %cst_47 [1] : vector<8x32xf32> to vector<8xf32>
    %106 = vector.shape_cast %105 : vector<8xf32> to vector<8x1xf32>
    %cst_48 = arith.constant 3.200000e+01 : f32
    %107 = vector.broadcast %cst_48 : f32 to vector<8x1xf32>
    %108 = arith.divf %106, %107 : vector<8x1xf32>
    %109 = vector.broadcast %101 : vector<8x1xf32> to vector<8x32xf32>
    %110 = arith.subf %97, %109 : vector<8x32xf32>
    %cst_49 = arith.constant 9.99999974E-6 : f32
    %111 = vector.broadcast %cst_49 : f32 to vector<8x1xf32>
    %112 = arith.addf %108, %111 : vector<8x1xf32>
    %113 = math.rsqrt %112 : vector<8x1xf32>
    %114 = vector.broadcast %113 : vector<8x1xf32> to vector<8x32xf32>
    %115 = arith.mulf %110, %114 : vector<8x32xf32>
    %c0_50 = arith.constant 0 : index
    %c0_51 = arith.constant 0 : index
    %116 = vector.load %arg9[%c0_50, %c0_51] : memref<1x32xf32, #tpu.memory_space<vmem>>, vector<1x32xf32>
    %117 = vector.broadcast %116 : vector<1x32xf32> to vector<8x32xf32>
    %118 = arith.mulf %115, %117 : vector<8x32xf32>
    %c0_52 = arith.constant 0 : index
    %c0_53 = arith.constant 0 : index
    %119 = vector.load %arg10[%c0_52, %c0_53] : memref<1x32xf32, #tpu.memory_space<vmem>>, vector<1x32xf32>
    %120 = vector.broadcast %119 : vector<1x32xf32> to vector<8x32xf32>
    %121 = arith.addf %118, %120 : vector<8x32xf32>
    %c0_54 = arith.constant 0 : index
    %c0_55 = arith.constant 0 : index
    %122 = vector.load %arg11[%c0_54, %c0_55] : memref<32x64xf32, #tpu.memory_space<vmem>>, vector<32x64xf32>
    %cst_56 = arith.constant dense<0.000000e+00> : vector<8x64xf32>
    %123 = tpu.matmul %121, %122, %cst_56 {dimension_numbers = #tpu.dot_dimension_numbers<[1], [0], [0], [1], [0, 0, 1, 1], [], []>} : vector<8x32xf32>, vector<32x64xf32>, vector<8x64xf32> -> vector<8x64xf32>
    %c0_57 = arith.constant 0 : index
    %c0_58 = arith.constant 0 : index
    %124 = vector.load %arg12[%c0_57, %c0_58] : memref<1x64xf32, #tpu.memory_space<vmem>>, vector<1x64xf32>
    %125 = vector.broadcast %124 : vector<1x64xf32> to vector<8x64xf32>
    %126 = arith.addf %123, %125 : vector<8x64xf32>
    %cst_59 = arith.constant 0.000000e+00 : f32
    %127 = vector.broadcast %cst_59 : f32 to vector<8x64xf32>
    %128 = arith.maximumf %126, %127 : vector<8x64xf32>
    %c0_60 = arith.constant 0 : index
    %c0_61 = arith.constant 0 : index
    %129 = vector.load %arg13[%c0_60, %c0_61] : memref<64x32xf32, #tpu.memory_space<vmem>>, vector<64x32xf32>
    %cst_62 = arith.constant dense<0.000000e+00> : vector<8x32xf32>
    %130 = tpu.matmul %128, %129, %cst_62 {dimension_numbers = #tpu.dot_dimension_numbers<[1], [0], [0], [1], [0, 0, 1, 1], [], []>} : vector<8x64xf32>, vector<64x32xf32>, vector<8x32xf32> -> vector<8x32xf32>
    %c0_63 = arith.constant 0 : index
    %c0_64 = arith.constant 0 : index
    %131 = vector.load %arg14[%c0_63, %c0_64] : memref<1x32xf32, #tpu.memory_space<vmem>>, vector<1x32xf32>
    %132 = vector.broadcast %131 : vector<1x32xf32> to vector<8x32xf32>
    %133 = arith.addf %130, %132 : vector<8x32xf32>
    %134 = arith.addf %121, %133 : vector<8x32xf32>
    %cst_65 = arith.constant dense<0.000000e+00> : vector<8xf32>
    %135 = vector.multi_reduction <add>, %134, %cst_65 [1] : vector<8x32xf32> to vector<8xf32>
    %136 = vector.shape_cast %135 : vector<8xf32> to vector<8x1xf32>
    %cst_66 = arith.constant 3.200000e+01 : f32
    %137 = vector.broadcast %cst_66 : f32 to vector<8x1xf32>
    %138 = arith.divf %136, %137 : vector<8x1xf32>
    %139 = vector.broadcast %138 : vector<8x1xf32> to vector<8x32xf32>
    %140 = arith.subf %134, %139 : vector<8x32xf32>
    %141 = arith.mulf %140, %140 : vector<8x32xf32>
    %cst_67 = arith.constant dense<0.000000e+00> : vector<8xf32>
    %142 = vector.multi_reduction <add>, %141, %cst_67 [1] : vector<8x32xf32> to vector<8xf32>
    %143 = vector.shape_cast %142 : vector<8xf32> to vector<8x1xf32>
    %cst_68 = arith.constant 3.200000e+01 : f32
    %144 = vector.broadcast %cst_68 : f32 to vector<8x1xf32>
    %145 = arith.divf %143, %144 : vector<8x1xf32>
    %146 = vector.broadcast %138 : vector<8x1xf32> to vector<8x32xf32>
    %147 = arith.subf %134, %146 : vector<8x32xf32>
    %cst_69 = arith.constant 9.99999974E-6 : f32
    %148 = vector.broadcast %cst_69 : f32 to vector<8x1xf32>
    %149 = arith.addf %145, %148 : vector<8x1xf32>
    %150 = math.rsqrt %149 : vector<8x1xf32>
    %151 = vector.broadcast %150 : vector<8x1xf32> to vector<8x32xf32>
    %152 = arith.mulf %147, %151 : vector<8x32xf32>
    %c0_70 = arith.constant 0 : index
    %c0_71 = arith.constant 0 : index
    %153 = vector.load %arg15[%c0_70, %c0_71] : memref<1x32xf32, #tpu.memory_space<vmem>>, vector<1x32xf32>
    %154 = vector.broadcast %153 : vector<1x32xf32> to vector<8x32xf32>
    %155 = arith.mulf %152, %154 : vector<8x32xf32>
    %c0_72 = arith.constant 0 : index
    %c0_73 = arith.constant 0 : index
    %156 = vector.load %arg16[%c0_72, %c0_73] : memref<1x32xf32, #tpu.memory_space<vmem>>, vector<1x32xf32>
    %157 = vector.broadcast %156 : vector<1x32xf32> to vector<8x32xf32>
    %158 = arith.addf %155, %157 : vector<8x32xf32>
    %c0_74 = arith.constant 0 : index
    %c0_75 = arith.constant 0 : index
    %c0_76 = arith.constant 0 : index
    %159 = vector.load %arg17[%c0_74, %c0_75, %c0_76] : memref<1x8x32xf32, #tpu.memory_space<vmem>>, vector<1x8x32xf32>
    %160 = vector.shape_cast %159 : vector<1x8x32xf32> to vector<8x32xf32>
    %161 = vector.shape_cast %158 : vector<8x32xf32> to vector<1x8x32xf32>
    tpu.vector_store %arg17[%c0_74, %c0_75, %c0_76], %161 {strides = array<i32>} : memref<1x8x32xf32, #tpu.memory_space<vmem>>, vector<1x8x32xf32>,
    return
  }
  func.func @transform_0(%arg0: i32) -> (i32, i32, i32) {
    %c0_i32 = arith.constant 0 : i32
    %c0_i32_0 = arith.constant 0 : i32
    %c0_i32_1 = arith.constant 0 : i32
    return %arg0, %c0_i32, %c0_i32_0 : i32, i32, i32
  }
  func.func @transform_1(%arg0: i32) -> (i32, i32, i32) {
    %c0_i32 = arith.constant 0 : i32
    %c0_i32_0 = arith.constant 0 : i32
    %c0_i32_1 = arith.constant 0 : i32
    return %arg0, %c0_i32, %c0_i32_0 : i32, i32, i32
  }
  func.func @transform_2(%arg0: i32) -> (i32, i32) {
    %c0_i32 = arith.constant 0 : i32
    %c0_i32_0 = arith.constant 0 : i32
    %c0_i32_1 = arith.constant 0 : i32
    return %c0_i32, %c0_i32_0 : i32, i32
  }
  func.func @transform_3(%arg0: i32) -> (i32, i32) {
    %c0_i32 = arith.constant 0 : i32
    %c0_i32_0 = arith.constant 0 : i32
    %c0_i32_1 = arith.constant 0 : i32
    return %c0_i32, %c0_i32_0 : i32, i32
  }
  func.func @transform_4(%arg0: i32) -> (i32, i32) {
    %c0_i32 = arith.constant 0 : i32
    %c0_i32_0 = arith.constant 0 : i32
    %c0_i32_1 = arith.constant 0 : i32
    return %c0_i32, %c0_i32_0 : i32, i32
  }
  func.func @transform_5(%arg0: i32) -> (i32, i32) {
    %c0_i32 = arith.constant 0 : i32
    %c0_i32_0 = arith.constant 0 : i32
    %c0_i32_1 = arith.constant 0 : i32
    return %c0_i32, %c0_i32_0 : i32, i32
  }
  func.func @transform_6(%arg0: i32) -> (i32, i32) {
    %c0_i32 = arith.constant 0 : i32
    %c0_i32_0 = arith.constant 0 : i32
    %c0_i32_1 = arith.constant 0 : i32
    return %c0_i32, %c0_i32_0 : i32, i32
  }
  func.func @transform_7(%arg0: i32) -> (i32, i32) {
    %c0_i32 = arith.constant 0 : i32
    %c0_i32_0 = arith.constant 0 : i32
    %c0_i32_1 = arith.constant 0 : i32
    return %c0_i32, %c0_i32_0 : i32, i32
  }
  func.func @transform_8(%arg0: i32) -> (i32, i32) {
    %c0_i32 = arith.constant 0 : i32
    %c0_i32_0 = arith.constant 0 : i32
    %c0_i32_1 = arith.constant 0 : i32
    return %c0_i32, %c0_i32_0 : i32, i32
  }
  func.func @transform_9(%arg0: i32) -> (i32, i32) {
    %c0_i32 = arith.constant 0 : i32
    %c0_i32_0 = arith.constant 0 : i32
    %c0_i32_1 = arith.constant 0 : i32
    return %c0_i32, %c0_i32_0 : i32, i32
  }
  func.func @transform_10(%arg0: i32) -> (i32, i32) {
    %c0_i32 = arith.constant 0 : i32
    %c0_i32_0 = arith.constant 0 : i32
    %c0_i32_1 = arith.constant 0 : i32
    return %c0_i32, %c0_i32_0 : i32, i32
  }
  func.func @transform_11(%arg0: i32) -> (i32, i32) {
    %c0_i32 = arith.constant 0 : i32
    %c0_i32_0 = arith.constant 0 : i32
    %c0_i32_1 = arith.constant 0 : i32
    return %c0_i32, %c0_i32_0 : i32, i32
  }
  func.func @transform_12(%arg0: i32) -> (i32, i32) {
    %c0_i32 = arith.constant 0 : i32
    %c0_i32_0 = arith.constant 0 : i32
    %c0_i32_1 = arith.constant 0 : i32
    return %c0_i32, %c0_i32_0 : i32, i32
  }
  func.func @transform_13(%arg0: i32) -> (i32, i32) {
    %c0_i32 = arith.constant 0 : i32
    %c0_i32_0 = arith.constant 0 : i32
    %c0_i32_1 = arith.constant 0 : i32
    return %c0_i32, %c0_i32_0 : i32, i32
  }
  func.func @transform_14(%arg0: i32) -> (i32, i32) {
    %c0_i32 = arith.constant 0 : i32
    %c0_i32_0 = arith.constant 0 : i32
    %c0_i32_1 = arith.constant 0 : i32
    return %c0_i32, %c0_i32_0 : i32, i32
  }
  func.func @transform_15(%arg0: i32) -> (i32, i32) {
    %c0_i32 = arith.constant 0 : i32
    %c0_i32_0 = arith.constant 0 : i32
    %c0_i32_1 = arith.constant 0 : i32
    return %c0_i32, %c0_i32_0 : i32, i32
  }
  func.func @transform_16(%arg0: i32) -> (i32, i32, i32) {
    %c0_i32 = arith.constant 0 : i32
    %c0_i32_0 = arith.constant 0 : i32
    %c0_i32_1 = arith.constant 0 : i32
    return %arg0, %c0_i32, %c0_i32_0 : i32, i32, i32
  }
}

</mosaic_0001>

<bundles_post_ra>
// kernel: encoder_layer_forward.1
= control target key start
LH: loop header
LB: loop body
LE: loop exit
PB: predicated region body
PF: predicated region fallthrough
CT: control target
= control target key end

     0   :  { %s2343_s21 = smov 0   ;;  %s2583_s0 = inlined_call_operand.vmem [shape: f32[2,8,32], index: 0, kind: input, shape index: {}]   ;;  %s2584_s1 = inlined_call_operand.vmem [shape: f32[2,8,32], index: 1, kind: input, shape index: {}]   ;;  %s2585_s2 = inlined_call_operand.vmem [shape: f32[32,64], index: 2, kind: input, shape index: {}]   ;;  %s2586_s3 = inlined_call_operand.vmem [shape: f32[1,64], index: 3, kind: input, shape index: {}]   ;;  %s2587_s4 = inlined_call_operand.vmem [shape: f32[32,32], index: 4, kind: input, shape index: {}]   ;;  %s2588_s5 = inlined_call_operand.vmem [shape: f32[1,32], index: 5, kind: input, shape index: {}]   ;;  %s2589_s6 = inlined_call_operand.vmem [shape: f32[32,32], index: 6, kind: input, shape index: {}]   ;;  %s2590_s7 = inlined_call_operand.vmem [shape: f32[1,32], index: 7, kind: input, shape index: {}]   ;;  %s2591_s8 = inlined_call_operand.vmem [shape: f32[1,32], index: 8, kind: input, shape index: {}]   ;;  %s2592_s9 = inlined_call_operand.vmem [shape: f32[1,32], index: 9, kind: input, shape index: {}]   ;;  %s2593_s10 = inlined_call_operand.vmem [shape: f32[32,64], index: 10, kind: input, shape index: {}]   ;;  %s2594_s11 = inlined_call_operand.vmem [shape: f32[1,64], index: 11, kind: input, shape index: {}]   ;;  %s2595_s12 = inlined_call_operand.vmem [shape: f32[64,32], index: 12, kind: input, shape index: {}]   ;;  %s2596_s13 = inlined_call_operand.vmem [shape: f32[1,32], index: 13, kind: input, shape index: {}]   ;;  %s2597_s14 = inlined_call_operand.vmem [shape: f32[1,32], index: 14, kind: input, shape index: {}]   ;;  %s2598_s15 = inlined_call_operand.vmem [shape: f32[1,32], index: 15, kind: input, shape index: {}]   ;;  %s2599_s16 = inlined_call_operand.vmem [shape: f32[2,8,32], index: 16, kind: output, shape index: {}]  }
   0x1   :  { %2600 = sst [smem:[#allocation2_spill]] %s2583_s0 }
   0x2 LB: > { %s1973_s22 = sadd.s32 4294967295, %s2246_s21   ;;  %p1977_p0 = scmp.ge.s32.totalorder %s2246_s21, 1  ;;  %s2246_s21 = sphi %s2343_s21, %s26_s21  }
   0x3   : > { %p470_p1 = scmp.lt.s32.totalorder %s2246_s21, 3 }
   0x5   : > { %p471_p2 = pnand %p1977_p0, %p470_p1 }
   0x6   : > { %v537_v0 = vld [vmem:[%s2585_s2] sm:$0xff] (!%p471_p2)  ;;  %v538_v1 = vld [vmem:[%s2585_s2 + $0x8] sm:$0xff] (!%p471_p2)  ;;  %v539_v2 = vld [vmem:[%s2585_s2 + $0x10] sm:$0xff] (!%p471_p2)  ;;  %v2248_v3 = vmov (!%p471_p2), 0.0|0.0   ;;  %vm2249_vm0 = vmmov (!%p471_p2), 0   ;;  %v2250_v6 = vmov (!%p471_p2), 0.0  }
   0x7   : > { %474 = sbr.rel (%p471_p2) target bundleno = 4170 (0x104a), region = 84  ;;  %2172 = vmatprep.subr.bf16.mxu0 (!%p471_p2), %v2248_v3  ;;  %v2173_v4 = vpack.c.bf16 (!%p471_p2), %v538_v1, %v537_v0  ;;  %v540_v5 = vld [vmem:[%s2585_s2 + $0x18] sm:$0xff] (!%p471_p2)  ;;  %2068 = vmatprep.mubr.msk.f32.mxu0 (!%p471_p2), %vm2249_vm0, %v2250_v6  ;;  %p522_p3 = scmp.lt.s32.totalorder (!%p471_p2), %s1973_s22, 1  ;;  %vm548_vm1 = vcmask (!%p471_p2), 261120   ;;  %v1981_v11 = vld [vmem:[%s2586_s3] ss:$0 sm:$0xff] (!%p471_p2) }
   0x8   : > { %2178 = vmatprep.subr.bf16.mxu1 (!%p471_p2), %v2248_v3  ;;  %2079 = vmatprep.mubr.msk.f32.mxu1 (!%p471_p2), %vm2249_vm0, %v2250_v6  ;;  %v2176_v7 = vpack.c.bf16 (!%p471_p2), %v540_v5, %v539_v2  ;;  %s2601_s19 = sld [smem:[#allocation2_spill]] (!%p471_p2)  ;;  %s2251_s27 = smov (!%p471_p2), 88   ;;  %vm710_vm2 = vcmask (!%p471_p2), 64512   ;;  %v622_v17 = vld [vmem:[%s2587_s4] sm:$0xff] (!%p471_p2)  ;;  %v623_v18 = vld [vmem:[%s2587_s4 + $0x8] sm:$0xff] (!%p471_p2)  ;;  %v624_v19 = vld [vmem:[%s2587_s4 + $0x10] sm:$0xff] (!%p471_p2) }
   0x9   : > { %2174 = vmatpush3.bf16.msra.mxu0 (!%p471_p2), %v2173_v4  ;;  %s2252_s28 = smov (!%p471_p2), 96   ;;  %v2179_v20 = vpack.c.bf16 (!%p471_p2), %v623_v18, %v622_v17  ;;  %v625_v21 = vld [vmem:[%s2587_s4 + $0x18] sm:$0xff] (!%p471_p2)  ;;  %v1983_v31 = vld [vmem:[%s2588_s5] ss:$0 sm:$0xff] (!%p471_p2)  ;;  %v1037_v50 = vld [vmem:[%s2589_s6 + $0x8] sm:$0xff] (!%p471_p2)  ;;  %vm1803_vm3 = vcmask (!%p471_p2), 523264  }
   0xa   : > { %2175 = vmatprep.subr.bf16.mxu0 (!%p471_p2), %v2248_v3  ;;  %v2182_v22 = vpack.c.bf16 (!%p471_p2), %v625_v21, %v624_v19  ;;  %v870_v55 = vld [vmem:[%s2589_s6] sm:$0xff] (!%p471_p2) }
   0xb   : > { %2180 = vmatpush3.bf16.msra.mxu1 (!%p471_p2), %v2179_v20 }
   0xc   : > { %2181 = vmatprep.subr.bf16.mxu1 (!%p471_p2), %v2248_v3 }
   0xd   : > { %2177 = vmatpush3.bf16.msra.mxu0 (!%p471_p2), %v2176_v7 }
   0xe   : > { %s2603_s22 = smov (!%p522_p3, %s1973_s22), 1  ;;  %2082 = vmatprep.subr.mxu0 %v2250_v6 }
   0xf   : > { %s2370_s0 = sshll.u32 %s2603_s22, 3  ;;  %2183 = vmatpush3.bf16.msra.mxu1 %v2182_v22 }
  0x10   : > { %s525_s20 = scalar_lea.vmem %s2601_s19, %s2370_s0  ;;  %s529_s25 = scalar_lea.vmem %s2584_s1, %s2370_s0  ;;  %2097 = vmatprep.subr.mxu1 %v2250_v6 }
  0x11   : > { %v2380_v8 = vld [vmem:[%s525_s20] sm:$0xff]  ;;  %s2256_s19 = smov 104   ;;  %s2257_s20 = smov 72  }
  0x12   : > { %v535_v9 = vld [vmem:[%s529_s25] sm:$0xff]  ;;  %2080 = vmatmul.mubr.msk.f32.vlgmr.msra.gmra.mrb[0].mxu1 %vm548_vm1, %v2380_v8  ;;  %s2253_s25 = smov 120  }
  0x13   : > { %v536_v10 = vadd.f32 %v535_v9, %v2380_v8  ;;  %2099 = vmatprep.mubr.msk.f32.mxu1 %vm2249_vm0, %v2250_v6 }
  0x15   : > { %2069 = vmatmul.mubr.msk.f32.vlgmr.msra.gmra.mrb[0].mxu0 %vm548_vm1, %v536_v10 }
  0x16   : > { %2084 = vmatprep.mubr.msk.f32.mxu0 %vm2249_vm0, %v2250_v6 }
  0xe5   : > { %v702_v32 = vpop.f32.mrb[0].mxu1 }
  0xe6   : > { %v2428_v33 = vadd.f32 %v1983_v31, %v702_v32  ;;  %v2081_v34 = vpop.f32.mrb[1].mxu1 }
  0xe8   : > { %v618_v12 = vpop.f32.mrb[0].mxu0 }
  0xe9   : > { %v2390_v13 = vadd.f32 %v1981_v11, %v618_v12  ;;  %v2070_v14 = vpop.f32.mrb[1].mxu0 }
  0xeb   : > { %873 = vrot.lane.b32.xlu1 %v2390_v13, %s2251_s27  ;;  %708 = vrot.lane.b32.xlu0 %v2390_v13, %s2252_s28  ;;  %v2396_v16 = vmul.f32 0.35355338, %v2390_v13  ;;  %s2254_s27 = smov 112   ;;  %s2255_s28 = smov 80  }
 0x15d   : > { %v709_v15 = vpop.permute.xlu0 %708  ;;  %v874_v35 = vpop.permute.xlu1 %873 }
 0x15e   : > { %2083 = vmatpush3.xpose.msk.msra.mxu0 %vm710_vm2, %v709_v15 }
 0x15f   : > { %2087 = vmatprep.subr.mxu0 %v2250_v6 }
 0x161   : > { %2085 = vmatmul.mubr.msk.f32.vlgmr.msra.gmra.mrb[2].mxu0 %vm710_vm2, %v2396_v16 }
 0x162   : > { %2089 = vmatprep.mubr.msk.f32.mxu0 %vm2249_vm0, %v2250_v6  ;;  %2088 = vmatpush3.msra.mxu0 %v2428_v33 }
 0x163   : > { %2092 = vmatprep.subr.mxu0 %v2250_v6 }
 0x234   : > { %v782_v23 = vpop.f32.mrb[2].mxu0 }
 0x235   : > { %v2086_v24 = vpop.f32.mrb[3].mxu0  ;;  %v786_v25 = vsel %vm710_vm2, %v782_v23, -inf }
 0x236   : > { %787 = vmax.xlane.f32.xlu0 %v786_v25 }
 0x2c3   : > { %v788_v26 = vpop.xlane.xlu0 %787 }
 0x2c4   : > { %v789_v27 = vsub.f32 %v782_v23, %v788_v26 }
 0x2c6   : > { %v790_v28 = vmul.f32 1.442695, %v789_v27 }
 0x2c8   : > { %2220 = vpow2.f32 %v790_v28 }
 0x2d2   : > { %v2221_v29 = vpop.eup %2220 }
 0x2d3   : > { %v792_v30 = vsel %vm710_vm2, %v2221_v29, 0.0 }
 0x2d4   : > { %793 = vadd.xlane.f32.xlu1 %v792_v30  ;;  %v1589_v30 = vld [vmem:[%s2589_s6 + $0x18] sm:$0xff] }
 0x2e5   : > { %871 = vrot.lane.b32.xlu1 %v2396_v16, %s2253_s25 }
 0x361   : > { %v794_v36 = vpop.xlane.xlu1 %793 }
 0x362   : > { %2222 = vrcp.f32 %v794_v36 }
 0x365   : > { %v872_v39 = vpop.permute.xlu1 %871 }
 0x36c   : > { %v2223_v37 = vpop.eup %2222 }
 0x36d   : > { %v796_v38 = vmul.f32 %v2223_v37, %v2221_v29 }
 0x36f   : > { %2090 = vmatmul.mubr.msk.f32.vlgmr.msra.gmra.mrb[4].mxu0 %vm710_vm2, %v796_v38 }
 0x370   : > { %2093 = vmatpush3.xpose.msk.msra.mxu0 %vm710_vm2, %v874_v35  ;;  %2094 = vmatprep.mubr.msk.f32.mxu0 %vm2249_vm0, %v2250_v6 }
 0x371   : > { %2102 = vmatprep.subr.mxu0 %v2250_v6 }
 0x373   : > { %2095 = vmatmul.mubr.msk.f32.vlgmr.msra.gmra.mrb[6].mxu0 %vm710_vm2, %v872_v39 }
 0x374   : > { %2104 = vmatprep.mubr.msk.f32.mxu0 %vm2249_vm0, %v2250_v6  ;;  %2103 = vmatpush3.msra.mxu0 %v1037_v50 }
 0x375   : > { %2112 = vmatprep.subr.mxu0 %v2250_v6 }
 0x442   : > { %v866_v40 = vpop.f32.mrb[4].mxu0 }
 0x443   : > { %v2091_v41 = vpop.f32.mrb[5].mxu0 }
 0x446   : > { %v945_v42 = vpop.f32.mrb[6].mxu0 }
 0x447   : > { %v2096_v43 = vpop.f32.mrb[7].mxu0  ;;  %v949_v44 = vsel %vm710_vm2, %v945_v42, -inf }
 0x448   : > { %950 = vmax.xlane.f32.xlu1 %v949_v44 }
 0x459   : > { %1184 = vrot.lane.b32.xlu1 %v2396_v16, %s2254_s27 }
 0x4d5   : > { %v951_v45 = vpop.xlane.xlu1 %950 }
 0x4d6   : > { %v952_v46 = vsub.f32 %v945_v42, %v951_v45 }
 0x4d8   : > { %v953_v47 = vmul.f32 1.442695, %v952_v46 }
 0x4d9   : > { %v1185_v59 = vpop.permute.xlu1 %1184 }
 0x4da   : > { %2224 = vpow2.f32 %v953_v47 }
 0x4e4   : > { %v2225_v48 = vpop.eup %2224 }
 0x4e5   : > { %v955_v49 = vsel %vm710_vm2, %v2225_v48, 0.0 }
 0x4e6   : > { %956 = vadd.xlane.f32.xlu0 %v955_v49 }
 0x4fc   : > { %961 = vrot.lane.b32.xlu0 %v2428_v33, %s2253_s25 }
 0x500   : > { %1186 = vrot.lane.b32.xlu0 %v2390_v13, %s2255_s28 }
 0x573   : > { %v957_v51 = vpop.xlane.xlu0 %956 }
 0x574   : > { %2226 = vrcp.f32 %v957_v51  ;;  %v1704_v51 = vld [vmem:[%s2593_s10 + $0x8] sm:$0xff] }
 0x577   : > { %v962_v52 = vpop.permute.xlu0 %961 }
 0x578   : > { %2098 = vmatpush3.msra.mxu1 %v962_v52 }
 0x579   : > { %2107 = vmatprep.subr.mxu1 %v2250_v6 }
 0x57b   : > { %v1187_v57 = vpop.permute.xlu0 %1186 }
 0x57e   : > { %v2227_v53 = vpop.eup %2226 }
 0x57f   : > { %v959_v54 = vmul.f32 %v2227_v53, %v2225_v48  ;;  %v1706_v53 = vld [vmem:[%s2593_s10 + $0x18] sm:$0xff] }
 0x581   : > { %2100 = vmatmul.mubr.msk.f32.vlgmr.msra.gmra.mrb[2].mxu1 %vm710_vm2, %v959_v54 }
 0x582   : > { %2108 = vmatpush3.msra.mxu1 %v870_v55  ;;  %2109 = vmatprep.mubr.msk.f32.mxu1 %vm2249_vm0, %v2250_v6  ;;  %v1788_v55 = vld [vmem:[%s2595_s12] sm:$0xff] }
 0x583   : > { %2117 = vmatprep.subr.mxu1 %v2250_v6 }
 0x585   : > { %2110 = vmatmul.mubr.msk.f32.vlgmr.msra.gmra.mrb[4].mxu1 %vm710_vm2, %v866_v40  ;;  %v2001_v40 = vld [vmem:[%s2590_s7] ss:$0 sm:$0xff] }
 0x586   : > { %2119 = vmatprep.mubr.msk.f32.mxu1 %vm2249_vm0, %v2250_v6 }
 0x654   : > { %v1033_v56 = vpop.f32.mrb[2].mxu1 }
 0x655   : > { %v2101_v58 = vpop.f32.mrb[3].mxu1  ;;  %2105 = vmatmul.mubr.msk.f32.vlgmr.msra.gmra.mrb[8].mxu0 %vm710_vm2, %v1033_v56  ;;  %v1789_v56 = vld [vmem:[%s2595_s12 + $0x8] sm:$0xff] }
 0x656   : > { %2113 = vmatpush3.xpose.msk.msra.mxu0 %vm710_vm2, %v1187_v57  ;;  %2114 = vmatprep.mubr.msk.f32.mxu0 %vm2249_vm0, %v2250_v6  ;;  %v1790_v57 = vld [vmem:[%s2595_s12 + $0x10] sm:$0xff]  ;;  %v2191_v58 = vpack.c.bf16 %v1789_v56, %v1788_v55 }
 0x657   : > { %2122 = vmatprep.subr.mxu0 %v2250_v6 }
 0x658   : > { %v1180_v60 = vpop.f32.mrb[4].mxu1 }
 0x659   : > { %v2111_v61 = vpop.f32.mrb[5].mxu1  ;;  %2115 = vmatmul.mubr.msk.f32.vlgmr.msra.gmra.mrb[10].mxu0 %vm710_vm2, %v1185_v59  ;;  %v1791_v59 = vld [vmem:[%s2595_s12 + $0x18] sm:$0xff] }
 0x65a   : > { %2124 = vmatprep.mubr.msk.f32.mxu0 %vm2249_vm0, %v2250_v6  ;;  %v1792_v61 = vld [vmem:[%s2595_s12 + $0x20] sm:$0xff] }
 0x728   : > { %v1107_v62 = vpop.f32.mrb[8].mxu0 }
 0x729   : > { %v1181_v63 = vadd.f32 %v1180_v60, %v1107_v62  ;;  %v2106_v0 = vpop.f32.mrb[9].mxu0  ;;  %v2194_v60 = vpack.c.bf16 %v1791_v59, %v1790_v57  ;;  %v1793_v62 = vld [vmem:[%s2595_s12 + $0x28] sm:$0xff] }
 0x72c   : > { %v1258_v1 = vpop.f32.mrb[10].mxu0 }
 0x72d   : > { %v2116_v2 = vpop.f32.mrb[11].mxu0  ;;  %v1262_v4 = vsel %vm710_vm2, %v1258_v1, -inf }
 0x72e   : > { %1263 = vmax.xlane.f32.xlu0 %v1262_v4 }
 0x744   : > { %1273 = vrot.lane.b32.xlu0 %v2428_v33, %s2254_s27  ;;  %s533_s27 = scalar_lea.vmem %s2599_s16, %s2370_s0 }
 0x748   : > { %1424 = vrot.lane.b32.xlu0 %v2396_v16, %s2256_s19 }
 0x7bb   : > { %v1264_v5 = vpop.xlane.xlu0 %1263 }
 0x7bc   : > { %v1265_v7 = vsub.f32 %v1258_v1, %v1264_v5  ;;  %v2002_v5 = vld [vmem:[%s2591_s8] ss:$0 sm:$0xff] }
 0x7be   : > { %v1266_v9 = vmul.f32 1.442695, %v1265_v7 }
 0x7bf   : > { %v1274_v10 = vpop.permute.xlu0 %1273 }
 0x7c0   : > { %2228 = vpow2.f32 %v1266_v9  ;;  %2118 = vmatpush3.msra.mxu1 %v1274_v10  ;;  %v2003_v9 = vld [vmem:[%s2592_s9] ss:$0 sm:$0xff] }
 0x7c1   : > { %2127 = vmatprep.subr.mxu1 %v2250_v6 }
 0x7c3   : > { %v1425_v18 = vpop.permute.xlu0 %1424 }
 0x7ca   : > { %v2229_v11 = vpop.eup %2228 }
 0x7cb   : > { %v1268_v12 = vsel %vm710_vm2, %v2229_v11, 0.0 }
 0x7cc   : > { %1269 = vadd.xlane.f32.xlu1 %v1268_v12  ;;  %v1795_v12 = vld [vmem:[%s2595_s12 + $0x38] sm:$0xff] }
 0x7dd   : > { %1426 = vrot.lane.b32.xlu1 %v2390_v13, %s2257_s20  ;;  %v1349_v13 = vld [vmem:[%s2589_s6 + $0x10] sm:$0xff] }
 0x7de   : > { %2123 = vmatpush3.msra.mxu0 %v1349_v13 }
 0x7df   : > { %2132 = vmatprep.subr.mxu0 %v2250_v6 }
 0x859   : > { %v1270_v14 = vpop.xlane.xlu1 %1269 }
 0x85a   : > { %2230 = vrcp.f32 %v1270_v14 }
 0x85d   : > { %v1427_v16 = vpop.permute.xlu1 %1426 }
 0x864   : > { %v2231_v15 = vpop.eup %2230 }
 0x865   : > { %v1272_v17 = vmul.f32 %v2231_v15, %v2229_v11  ;;  %v2004_v15 = vld [vmem:[%s2594_s11] ss:$0 sm:$0xff] }
 0x867   : > { %2120 = vmatmul.mubr.msk.f32.vlgmr.msra.gmra.mrb[6].mxu1 %vm710_vm2, %v1272_v17 }
 0x868   : > { %2128 = vmatpush3.xpose.msk.msra.mxu1 %vm710_vm2, %v1427_v16  ;;  %2129 = vmatprep.mubr.msk.f32.mxu1 %vm2249_vm0, %v2250_v6 }
 0x869   : > { %2137 = vmatprep.subr.mxu1 %v2250_v6 }
 0x86b   : > { %2130 = vmatmul.mubr.msk.f32.vlgmr.msra.gmra.mrb[8].mxu1 %vm710_vm2, %v1425_v18 }
 0x86c   : > { %2139 = vmatprep.mubr.msk.f32.mxu1 %vm2249_vm0, %v2250_v6  ;;  %2138 = vmatpush3.msra.mxu1 %v1589_v30 }
 0x86d   : > { %2190 = vmatprep.subr.bf16.mxu1 %v2248_v3 }
 0x93a   : > { %v1345_v19 = vpop.f32.mrb[6].mxu1 }
 0x93b   : > { %v2121_v20 = vpop.f32.mrb[7].mxu1  ;;  %2125 = vmatmul.mubr.msk.f32.vlgmr.msra.gmra.mrb[12].mxu0 %vm710_vm2, %v1345_v19  ;;  %v2006_v19 = vld [vmem:[%s2596_s13] ss:$0 sm:$0xff] }
 0x93c   : > { %2134 = vmatprep.mubr.msk.f32.mxu0 %vm2249_vm0, %v2250_v6 }
 0x93e   : > { %v1498_v21 = vpop.f32.mrb[8].mxu1 }
 0x93f   : > { %v2131_v22 = vpop.f32.mrb[9].mxu1  ;;  %v1502_v23 = vsel %vm710_vm2, %v1498_v21, -inf }
 0x940   : > { %1503 = vmax.xlane.f32.xlu0 %v1502_v23 }
 0x956   : > { %1513 = vrot.lane.b32.xlu0 %v2428_v33, %s2256_s19 }
 0x9cd   : > { %v1504_v24 = vpop.xlane.xlu0 %1503 }
 0x9ce   : > { %v1505_v25 = vsub.f32 %v1498_v21, %v1504_v24 }
 0x9d0   : > { %v1506_v26 = vmul.f32 1.442695, %v1505_v25 }
 0x9d1   : > { %v1514_v27 = vpop.permute.xlu0 %1513 }
 0x9d2   : > { %2232 = vpow2.f32 %v1506_v26  ;;  %2133 = vmatpush3.msra.mxu0 %v1514_v27 }
 0x9d3   : > { %2184 = vmatprep.subr.bf16.mxu0 %v2248_v3 }
 0x9dc   : > { %v2233_v28 = vpop.eup %2232 }
 0x9dd   : > { %v1508_v29 = vsel %vm710_vm2, %v2233_v28, 0.0 }
 0x9de   : > { %1509 = vadd.xlane.f32.xlu1 %v1508_v29 }
 0xa0e   : > { %v1419_v31 = vpop.f32.mrb[12].mxu0 }
 0xa0f   : > { %v1423_v32 = vadd.f32 %v1419_v31, %v1181_v63  ;;  %v2126_v33 = vpop.f32.mrb[13].mxu0  ;;  %v2197_v63 = vpack.c.bf16 %v1793_v62, %v1792_v61 }
 0xa6b   : > { %v1510_v34 = vpop.xlane.xlu1 %1509 }
 0xa6c   : > { %2234 = vrcp.f32 %v1510_v34  ;;  %v2008_v34 = vld [vmem:[%s2597_s14] ss:$0 sm:$0xff] }
 0xa76   : > { %v2235_v35 = vpop.eup %2234 }
 0xa77   : > { %v1512_v36 = vmul.f32 %v2235_v35, %v2233_v28 }
 0xa79   : > { %2135 = vmatmul.mubr.msk.f32.vlgmr.msra.gmra.mrb[14].mxu0 %vm710_vm2, %v1512_v36  ;;  %v2009_v36 = vld [vmem:[%s2598_s15] ss:$0 sm:$0xff] }
 0xa7a   : > { %2150 = vmatprep.mubr.msk.f32.mxu0 %vm2249_vm0, %v2250_v6 }
 0xb4c   : > { %v1585_v37 = vpop.f32.mrb[14].mxu0 }
 0xb4d   : > { %v2136_v38 = vpop.f32.mrb[15].mxu0  ;;  %2140 = vmatmul.mubr.msk.f32.vlgmr.msra.gmra.mrb[10].mxu1 %vm710_vm2, %v1585_v37 }
 0xb4e   : > { %2169 = vmatprep.mubr.msk.f32.mxu1 %vm2249_vm0, %v2250_v6  ;;  %v1703_v6 = vld [vmem:[%s2593_s10] sm:$0xff]  ;;  %2192 = vmatpush3.bf16.msra.mxu1 %v2191_v58 }
 0xb4f   : > { %v2185_v52 = vpack.c.bf16 %v1704_v51, %v1703_v6  ;;  %2193 = vmatprep.subr.bf16.mxu1 %v2248_v3 }
 0xb51   : > { %2186 = vmatpush3.bf16.msra.mxu0 %v2185_v52 }
 0xb52   : > { %2187 = vmatprep.subr.bf16.mxu0 %v2248_v3  ;;  %2195 = vmatpush3.bf16.msra.mxu1 %v2194_v60 }
 0xb53   : > { %2196 = vmatprep.subr.bf16.mxu1 %v2248_v3 }
 0xb56   : > { %2198 = vmatpush3.bf16.msra.mxu1 %v2197_v63 }
 0xb57   : > { %2199 = vmatprep.subr.bf16.mxu1 %v2248_v3  ;;  %v1794_v3 = vld [vmem:[%s2595_s12 + $0x30] sm:$0xff] }
 0xb58   : > { %v2200_v14 = vpack.c.bf16 %v1795_v12, %v1794_v3 }
 0xb5a   : > { %2201 = vmatpush3.bf16.msra.mxu1 %v2200_v14 }
 0xc20   : > { %v1659_v39 = vpop.f32.mrb[10].mxu1 }
 0xc21   : > { %v1663_v41 = vadd.f32 %v1659_v39, %v1423_v32  ;;  %v2141_v42 = vpop.f32.mrb[11].mxu1 }
 0xc23   : > { %v1671_v43 = vadd.f32 %v2001_v40, %v1663_v41 }
 0xc25   : > { %v1672_v44 = vadd.f32 %v1671_v43, %v2380_v8  ;;  %v1705_v8 = vld [vmem:[%s2593_s10 + $0x10] sm:$0xff] }
 0xc26   : > { %v2188_v54 = vpack.c.bf16 %v1706_v53, %v1705_v8 }
 0xc27   : > { %v1673_v45 = vsel %vm548_vm1, %v1672_v44, 0.0 }
 0xc28   : > { %1674 = vadd.xlane.f32.xlu1 %v1673_v45  ;;  %2189 = vmatpush3.bf16.msra.mxu0 %v2188_v54 }
 0xcb5   : > { %v1675_v46 = vpop.xlane.xlu1 %1674 }
 0xcb6   : > { %v1677_v47 = vmul.f32 0.03125, %v1675_v46 }
 0xcb8   : > { %v1678_v48 = vsub.f32 %v1672_v44, %v1677_v47 }
 0xcba   : > { %v1679_v49 = vmul.f32 %v1678_v48, %v1678_v48 }
 0xcbc   : > { %v1680_v50 = vsel %vm548_vm1, %v1679_v49, 0.0 }
 0xcbd   : > { %1681 = vadd.xlane.f32.xlu1 %v1680_v50 }
 0xd4a   : > { %v1682_v0 = vpop.xlane.xlu1 %1681 }
 0xd4b   : > { %v1683_v1 = vmul.f32 0.03125, %v1682_v0 }
 0xd4d   : > { %v1684_v2 = vadd.f32 1e-05, %v1683_v1 }
 0xd4f   : > { %2236 = vrsqrt.f32 %v1684_v2 }
 0xd59   : > { %v2237_v4 = vpop.eup %2236 }
 0xd5a   : > { %v1686_v7 = vmul.f32 %v2237_v4, %v1678_v48 }
 0xd5c   : > { %v1694_v10 = vmul.f32 %v2002_v5, %v1686_v7 }
 0xd5e   : > { %v1702_v11 = vadd.f32 %v2003_v9, %v1694_v10 }
 0xd60   : > { %2151 = vmatmul.mubr.msk.f32.vlgmr.msra.gmra.mrb[16].mxu0 %vm548_vm1, %v1702_v11 }
 0xe33   : > { %v1783_v17 = vpop.f32.mrb[16].mxu0 }
 0xe34   : > { %v1784_v16 = vadd.f32 %v2004_v15, %v1783_v17  ;;  %v2152_v18 = vpop.f32.mrb[17].mxu0 }
 0xe36   : > { %v1787_v13 = vmax.f32 %v1784_v16, 0.0 }
 0xe38   : > { %2170 = vmatmul.mubr.msk.f32.vlgmr.msra.gmra.mrb[12].mxu1 %vm1803_vm3, %v1787_v13 }
 0xf0b   : > { %v1873_v20 = vpop.f32.mrb[12].mxu1 }
 0xf0c   : > { %v1874_v21 = vadd.f32 %v2006_v19, %v1873_v20  ;;  %v2171_v22 = vpop.f32.mrb[13].mxu1 }
 0xf0e   : > { %v1877_v23 = vadd.f32 %v1874_v21, %v1702_v11 }
 0xf10   : > { %v1878_v24 = vsel %vm548_vm1, %v1877_v23, 0.0 }
 0xf11   : > { %1879 = vadd.xlane.f32.xlu0 %v1878_v24 }
 0xf9e   : > { %v1880_v25 = vpop.xlane.xlu0 %1879 }
 0xf9f   : > { %v1881_v26 = vmul.f32 0.03125, %v1880_v25 }
 0xfa1   : > { %v1882_v27 = vsub.f32 %v1877_v23, %v1881_v26 }
 0xfa3   : > { %v1883_v28 = vmul.f32 %v1882_v27, %v1882_v27 }
 0xfa5   : > { %v1884_v29 = vsel %vm548_vm1, %v1883_v28, 0.0 }
 0xfa6   : > { %1885 = vadd.xlane.f32.xlu1 %v1884_v29 }
0x1033   : > { %v1886_v30 = vpop.xlane.xlu1 %1885 }
0x1034   : > { %v1887_v31 = vmul.f32 0.03125, %v1886_v30 }
0x1036   : > { %v1888_v32 = vadd.f32 1e-05, %v1887_v31 }
0x1038   : > { %2238 = vrsqrt.f32 %v1888_v32 }
0x1042   : > { %v2239_v33 = vpop.eup %2238 }
0x1043   : > { %v1890_v35 = vmul.f32 %v2239_v33, %v1882_v27 }
0x1045   : > { %v1898_v37 = vmul.f32 %v2008_v34, %v1890_v35 }
0x1047   : > { %v1906_v38 = vadd.f32 %v2009_v36, %v1898_v37 }
0x1049   : > { %1907 = vst.msk [vmem:[%s533_s27] sm:$0xff] %vm548_vm1, %v1906_v38 }
0x104a PF: > { %s26_s21 = sadd.s32 1, %s2246_s21  }
0x104b   : > { %p23_p4 = scmp.ge.s32.totalorder %s26_s21, 4  }
0x104d   :  { %25 = sbr.rel (!%p23_p4) target bundleno = 2 (0x2), region = 117 }

</bundles_post_ra>
